<compile_context>
chip_gen: v6e
topology: v6e:2x2x1
jax: 0.10.0
libtpu: 0.0.40
codegen_flags: <defaults>
</compile_context>

<pallas_src>
import functools

import numpy as np
import jax
import jax.numpy as jnp
from jax import lax
from jax.experimental import pallas as pl
from jax.experimental.pallas import tpu as pltpu

_LANE = 128
_N_KPARAMS = 13  # g1 g2 gL inv_tau_w u1 u3 inv_u2 inv_u4 inv_2u4 V1 V2 VL I


# ----------------------------------------------------------------------------
# Shared RHS math (used by both kernels), all f32, no per-element divides.
# ----------------------------------------------------------------------------
def _morris_lecar_rhs(v, w, p):
    (g1, g2, gL, inv_tau_w, u1, u3, inv_u2, inv_u4, inv_2u4, V1, V2, VL, I) = p
    # m   = 1/(1+exp(2*(u1-v)/u2))  == 0.5*(1 + tanh((v-u1)/u2))
    # wst = 1/(1+exp(2*(u3-v)/u4))  == 0.5*(1 + tanh((v-u3)/u4))
    m = 0.5 + 0.5 * jnp.tanh((v - u1) * inv_u2)
    wst = 0.5 + 0.5 * jnp.tanh((v - u3) * inv_u4)
    # tau = tau_w / cosh(a), a = (v-u3)/(2*u4); cosh(a) = rsqrt(1 - tanh(a)^2)
    ta = jnp.tanh((v - u3) * inv_2u4)
    cosh_a = lax.rsqrt(1.0 - ta * ta)
    dv = (-g1 * m * (v - V1)
          - g2 * w * (v - V2)
          - gL * (v - VL)
          + I)
    dw = (wst - w) * cosh_a * inv_tau_w        # == (wst - w) / tau
    return dv, dw


def _read_params(params_ref):
    return tuple(params_ref[i] for i in range(_N_KPARAMS))


# ----------------------------------------------------------------------------
# Kernels
# ----------------------------------------------------------------------------
def odefunc_kernel(params_ref, x_ref, dx_ref):
    """Single RHS evaluation on a (2, TR, 128) state tile."""
    p = _read_params(params_ref)
    v = x_ref[0, :, :]
    w = x_ref[1, :, :]
    dv, dw = _morris_lecar_rhs(v, w, p)
    dx_ref[0, :, :] = dv
    dx_ref[1, :, :] = dw


def euler_kernel(params_ref, dt_ref, y0_ref, y_ref, *, n_steps):
    """Fused explicit-Euler integration: n_steps RHS evals with the state
    resident in VMEM/vregs for the whole loop (one kernel launch total)."""
    p = _read_params(params_ref)
    dt = dt_ref[0]
    (g1, g2, gL, inv_tau_w, u1, u3, inv_u2, inv_u4, inv_2u4, V1, V2, VL, I) = p
    # Pre-scale the linear coefficients by dt once (scalar ops, once per tile)
    # so the RHS directly returns dt*dv / dt*dw -> no per-element dt multiply
    # inside the step loop.
    p_dt = (dt * g1, dt * g2, dt * gL, dt * inv_tau_w,
            u1, u3, inv_u2, inv_u4, inv_2u4, V1, V2, VL, dt * I)

    v = y0_ref[0, :, :]
    w = y0_ref[1, :, :]

    if n_steps <= 64:
        # Small static trip count: fully unroll for LLO scheduler visibility.
        for _ in range(n_steps):
            dv, dw = _morris_lecar_rhs(v, w, p_dt)
            v = v + dv
            w = w + dw
    else:
        def body(_, vw):
            vv, ww = vw
            dv, dw = _morris_lecar_rhs(vv, ww, p_dt)
            return (vv + dv, ww + dw)
        v, w = lax.fori_loop(0, n_steps, body, (v, w))

    y_ref[0, :, :] = v
    y_ref[1, :, :] = w


# ----------------------------------------------------------------------------
# Parameter handling
# ----------------------------------------------------------------------------
def make_params(randomseed_initialparams: int) -> jnp.ndarray:
    """Deterministically reproduce the module's __init__ parameter sampling.
    Returns the raw 12-vector [g1,g2,gL,tau_w,u1,u2,u3,u4,V1,V2,VL,I]."""
    feed = {'g1': 4.0, 'g2': 8.0, 'gL': 2.0, 'u1': -1.2, 'u2': 18.0,
            'u3': 12.0, 'u4': 17.4, 'V1': 120.0, 'V2': -84.0, 'VL': -60.0,
            'tau_w': 1.0 / (1.0 / 15.0), 'I': 42.0}
    np.random.seed(randomseed_initialparams)
    init_values_rand = {
        'g1': np.random.uniform(3.6, 4.4),
        'g2': np.random.uniform(1, 25),
        'gL': np.random.uniform(0.1, 10),
        'tau_w': np.random.uniform(5, 25),
    }
    vals = [init_values_rand['g1'], init_values_rand['g2'],
            init_values_rand['gL'], init_values_rand['tau_w'],
            feed['u1'], feed['u2'], feed['u3'], feed['u4'],
            feed['V1'], feed['V2'], feed['VL'], feed['I']]
    return jnp.asarray(vals, dtype=jnp.float32)


def derive_kernel_params(params: jnp.ndarray) -> jnp.ndarray:
    """Precompute scalar reciprocals once (outside the kernel) so the kernel
    never issues a per-element divide."""
    g1, g2, gL, tau_w, u1, u2, u3, u4, V1, V2, VL, I = (
        params[i] for i in range(12))
    return jnp.stack([g1, g2, gL, 1.0 / tau_w,
                      u1, u3,
                      1.0 / u2, 1.0 / u4, 1.0 / (2.0 * u4),
                      V1, V2, VL, I]).astype(jnp.float32)


# ----------------------------------------------------------------------------
# Layout helpers
# ----------------------------------------------------------------------------
def _tile_rows(R: int) -> int:
    if R % 8 != 0:
        return R            # full-extent block (allowed for any size)
    for tr in (512, 256, 128, 64, 32, 16, 8):
        if R % tr == 0:
            return tr
    return R


def pack_state(y: jnp.ndarray) -> jnp.ndarray:
    """(N, 2) -> lane/sublane-dense (2, R, 128), zero-padded along N."""
    N = y.shape[0]
    Np = ((N + _LANE - 1) // _LANE) * _LANE
    x = y.T.astype(jnp.float32)                     # (2, N)
    if Np != N:
        x = jnp.pad(x, ((0, 0), (0, Np - N)))
    return x.reshape(2, Np // _LANE, _LANE)


def unpack_state(x: jnp.ndarray, N: int) -> jnp.ndarray:
    """(2, R, 128) -> (N, 2)."""
    return x.reshape(2, -1)[:, :N].T


# ----------------------------------------------------------------------------
# pallas_call wrappers
# ----------------------------------------------------------------------------
def ode_func_planar(kparams: jnp.ndarray, x: jnp.ndarray) -> jnp.ndarray:
    """RHS evaluation in the kernel-native (2, R, 128) layout."""
    _, R, L = x.shape
    TR = _tile_rows(R)
    return pl.pallas_call(
        odefunc_kernel,
        out_shape=jax.ShapeDtypeStruct((2, R, L), jnp.float32),
        grid=(R // TR,),
        in_specs=[
            pl.BlockSpec(memory_space=pltpu.MemorySpace.SMEM),   # params
            pl.BlockSpec((2, TR, L), lambda i: (0, i, 0)),       # state
        ],
        out_specs=pl.BlockSpec((2, TR, L), lambda i: (0, i, 0)),
        compiler_params=pltpu.CompilerParams(
            dimension_semantics=("parallel",)),
    )(kparams, x)


def ode_integrate_planar(kparams: jnp.ndarray, x0: jnp.ndarray,
                         dt: float, n_steps: int) -> jnp.ndarray:
    """Fused explicit-Euler integrator: one pallas_call for n_steps steps."""
    _, R, L = x0.shape
    TR = _tile_rows(R)
    dt_arr = jnp.asarray([dt], dtype=jnp.float32)
    kernel = functools.partial(euler_kernel, n_steps=int(n_steps))
    return pl.pallas_call(
        kernel,
        out_shape=jax.ShapeDtypeStruct((2, R, L), jnp.float32),
        grid=(R // TR,),
        in_specs=[
            pl.BlockSpec(memory_space=pltpu.MemorySpace.SMEM),   # params
            pl.BlockSpec(memory_space=pltpu.MemorySpace.SMEM),   # dt
            pl.BlockSpec((2, TR, L), lambda i: (0, i, 0)),       # y0
        ],
        out_specs=pl.BlockSpec((2, TR, L), lambda i: (0, i, 0)),
        compiler_params=pltpu.CompilerParams(
            dimension_semantics=("parallel",)),
    )(kparams, dt_arr, x0)


def ode_func(params: jnp.ndarray, t, y: jnp.ndarray) -> jnp.ndarray:
    """Equivalent of ODEFunc.forward(t, y); y has shape (N, 2), returns (N, 2).
    Packs to the lane-dense layout exactly once at the call boundary."""
    del t  # unused in the PyTorch forward's math
    N = y.shape[0]
    kp = derive_kernel_params(params)
    dx = ode_func_planar(kp, pack_state(y))
    return unpack_state(dx, N)


# ----------------------------------------------------------------------------
# Pure-numpy reference mirroring the PyTorch forward (exp/cosh form, f64)
# ----------------------------------------------------------------------------
def ode_func_ref(params: np.ndarray, y: np.ndarray) -> np.ndarray:
    g1, g2, gL, tau_w, u1, u2, u3, u4, V1, V2, VL, I = [float(p) for p in params]
    x = y.T
    v, w = x[0], x[1]
    m = 1.0 / (1.0 + np.exp(2.0 * (u1 - v) / u2))
    wst = 1.0 / (1.0 + np.exp(2.0 * (u3 - v) / u4))
    tau = tau_w / np.cosh((v - u3) / (2.0 * u4))
    dv = -g1 * m * (v - V1) - g2 * w * (v - V2) - gL * (v - VL) + I
    dw = (wst - w) / tau
    return np.stack([dv, dw], axis=0).T


if __name__ == "__main__":
    N = 256           # small batch of (V, w) initial states; multiple of 128 -> dense tiles
    seed_for_params = 0

    params = make_params(seed_for_params)

    key = jax.random.PRNGKey(0)
    kv, kw = jax.random.split(key)
    V0 = jax.random.uniform(kv, (N,), minval=-80.0, maxval=40.0, dtype=jnp.float32)
    W0 = jax.random.uniform(kw, (N,), minval=0.0, maxval=1.0, dtype=jnp.float32)
    y = jnp.stack([V0, W0], axis=1)  # (N, 2) — same layout as PyTorch input y

    # --- single RHS evaluation (matches ODEFunc.forward semantics) ----------
    t = jnp.float32(0.0)
    dy = jax.block_until_ready(ode_func(params, t, y))
    dy_ref = ode_func_ref(np.asarray(params, dtype=np.float64),
                          np.asarray(y, dtype=np.float64))
    np.testing.assert_allclose(np.asarray(dy), dy_ref, rtol=1e-4, atol=1e-2)

    # --- fused Euler integration (state resident in VMEM across steps) ------
    dt, n_steps = 0.005, 20
    kp = derive_kernel_params(params)
    x0 = pack_state(y)
    x_fused = jax.block_until_ready(ode_integrate_planar(kp, x0, dt, n_steps))

    # Reference: the same Euler scheme, but one pallas RHS call per step.
    x_step = x0
    for _ in range(n_steps):
        x_step = x_step + jnp.float32(dt) * ode_func_planar(kp, x_step)
    x_step = jax.block_until_ready(x_step)
    np.testing.assert_allclose(np.asarray(x_fused), np.asarray(x_step),
                               rtol=5e-3, atol=1e-1)

    print("KERNEL_OK")
</pallas_src>

<mosaic_0001>
module attributes {stable_mosaic.version = 11 : i64} {
  func.func @odefunc_kernel(%arg0: i32, %arg1: memref<13xf32, #tpu.memory_space<smem>>, %arg2: memref<2x2x128xf32, #tpu.memory_space<vmem>>, %arg3: memref<2x2x128xf32, #tpu.memory_space<vmem>>) attributes {dimension_semantics = [#tpu.dimension_semantics<parallel>], iteration_bounds = array<i64: 1>, scalar_prefetch = 0 : i64, scratch_operands = 0 : i64, tpu.core_type = #tpu.core_type<tc>, window_params = [{transform_indices = @transform_0, window_bounds = array<i64: 13>}, {transform_indices = @transform_1, window_bounds = array<i64: 2, 2, 128>}, {transform_indices = @transform_2, window_bounds = array<i64: 2, 2, 128>}]} {
    %c0 = arith.constant 0 : index
    %0 = memref.load %arg1[%c0] : memref<13xf32, #tpu.memory_space<smem>>
    %c1 = arith.constant 1 : index
    %1 = memref.load %arg1[%c1] : memref<13xf32, #tpu.memory_space<smem>>
    %c2 = arith.constant 2 : index
    %2 = memref.load %arg1[%c2] : memref<13xf32, #tpu.memory_space<smem>>
    %c3 = arith.constant 3 : index
    %3 = memref.load %arg1[%c3] : memref<13xf32, #tpu.memory_space<smem>>
    %c4 = arith.constant 4 : index
    %4 = memref.load %arg1[%c4] : memref<13xf32, #tpu.memory_space<smem>>
    %c5 = arith.constant 5 : index
    %5 = memref.load %arg1[%c5] : memref<13xf32, #tpu.memory_space<smem>>
    %c6 = arith.constant 6 : index
    %6 = memref.load %arg1[%c6] : memref<13xf32, #tpu.memory_space<smem>>
    %c7 = arith.constant 7 : index
    %7 = memref.load %arg1[%c7] : memref<13xf32, #tpu.memory_space<smem>>
    %c8 = arith.constant 8 : index
    %8 = memref.load %arg1[%c8] : memref<13xf32, #tpu.memory_space<smem>>
    %c9 = arith.constant 9 : index
    %9 = memref.load %arg1[%c9] : memref<13xf32, #tpu.memory_space<smem>>
    %c10 = arith.constant 10 : index
    %10 = memref.load %arg1[%c10] : memref<13xf32, #tpu.memory_space<smem>>
    %c11 = arith.constant 11 : index
    %11 = memref.load %arg1[%c11] : memref<13xf32, #tpu.memory_space<smem>>
    %c12 = arith.constant 12 : index
    %12 = memref.load %arg1[%c12] : memref<13xf32, #tpu.memory_space<smem>>
    %c0_0 = arith.constant 0 : index
    %c0_1 = arith.constant 0 : index
    %c0_2 = arith.constant 0 : index
    %13 = vector.load %arg2[%c0_0, %c0_1, %c0_2] : memref<2x2x128xf32, #tpu.memory_space<vmem>>, vector<1x2x128xf32>
    %14 = vector.shape_cast %13 : vector<1x2x128xf32> to vector<2x128xf32>
    %c1_3 = arith.constant 1 : index
    %c0_4 = arith.constant 0 : index
    %c0_5 = arith.constant 0 : index
    %15 = vector.load %arg2[%c1_3, %c0_4, %c0_5] : memref<2x2x128xf32, #tpu.memory_space<vmem>>, vector<1x2x128xf32>
    %16 = vector.shape_cast %15 : vector<1x2x128xf32> to vector<2x128xf32>
    %17 = vector.broadcast %4 : f32 to vector<2x128xf32>
    %18 = arith.subf %14, %17 : vector<2x128xf32>
    %19 = vector.broadcast %6 : f32 to vector<2x128xf32>
    %20 = arith.mulf %18, %19 : vector<2x128xf32>
    %21 = math.tanh %20 : vector<2x128xf32>
    %cst = arith.constant 5.000000e-01 : f32
    %22 = vector.broadcast %cst : f32 to vector<2x128xf32>
    %23 = arith.mulf %22, %21 : vector<2x128xf32>
    %cst_6 = arith.constant 5.000000e-01 : f32
    %24 = vector.broadcast %cst_6 : f32 to vector<2x128xf32>
    %25 = arith.addf %24, %23 : vector<2x128xf32>
    %26 = vector.broadcast %5 : f32 to vector<2x128xf32>
    %27 = arith.subf %14, %26 : vector<2x128xf32>
    %28 = vector.broadcast %7 : f32 to vector<2x128xf32>
    %29 = arith.mulf %27, %28 : vector<2x128xf32>
    %30 = math.tanh %29 : vector<2x128xf32>
    %cst_7 = arith.constant 5.000000e-01 : f32
    %31 = vector.broadcast %cst_7 : f32 to vector<2x128xf32>
    %32 = arith.mulf %31, %30 : vector<2x128xf32>
    %cst_8 = arith.constant 5.000000e-01 : f32
    %33 = vector.broadcast %cst_8 : f32 to vector<2x128xf32>
    %34 = arith.addf %33, %32 : vector<2x128xf32>
    %35 = vector.broadcast %5 : f32 to vector<2x128xf32>
    %36 = arith.subf %14, %35 : vector<2x128xf32>
    %37 = vector.broadcast %8 : f32 to vector<2x128xf32>
    %38 = arith.mulf %36, %37 : vector<2x128xf32>
    %39 = math.tanh %38 : vector<2x128xf32>
    %40 = arith.mulf %39, %39 : vector<2x128xf32>
    %cst_9 = arith.constant 1.000000e+00 : f32
    %41 = vector.broadcast %cst_9 : f32 to vector<2x128xf32>
    %42 = arith.subf %41, %40 : vector<2x128xf32>
    %43 = math.rsqrt %42 : vector<2x128xf32>
    %cst_10 = arith.constant 0.000000e+00 : f32
    %44 = arith.subf %cst_10, %0 : f32
    %45 = vector.broadcast %44 : f32 to vector<2x128xf32>
    %46 = arith.mulf %45, %25 : vector<2x128xf32>
    %47 = vector.broadcast %9 : f32 to vector<2x128xf32>
    %48 = arith.subf %14, %47 : vector<2x128xf32>
    %49 = arith.mulf %46, %48 : vector<2x128xf32>
    %50 = vector.broadcast %1 : f32 to vector<2x128xf32>
    %51 = arith.mulf %50, %16 : vector<2x128xf32>
    %52 = vector.broadcast %10 : f32 to vector<2x128xf32>
    %53 = arith.subf %14, %52 : vector<2x128xf32>
    %54 = arith.mulf %51, %53 : vector<2x128xf32>
    %55 = arith.subf %49, %54 : vector<2x128xf32>
    %56 = vector.broadcast %11 : f32 to vector<2x128xf32>
    %57 = arith.subf %14, %56 : vector<2x128xf32>
    %58 = vector.broadcast %2 : f32 to vector<2x128xf32>
    %59 = arith.mulf %58, %57 : vector<2x128xf32>
    %60 = arith.subf %55, %59 : vector<2x128xf32>
    %61 = vector.broadcast %12 : f32 to vector<2x128xf32>
    %62 = arith.addf %60, %61 : vector<2x128xf32>
    %63 = arith.subf %34, %16 : vector<2x128xf32>
    %64 = arith.mulf %63, %43 : vector<2x128xf32>
    %65 = vector.broadcast %3 : f32 to vector<2x128xf32>
    %66 = arith.mulf %64, %65 : vector<2x128xf32>
    %c0_11 = arith.constant 0 : index
    %c0_12 = arith.constant 0 : index
    %c0_13 = arith.constant 0 : index
    %67 = vector.load %arg3[%c0_11, %c0_12, %c0_13] : memref<2x2x128xf32, #tpu.memory_space<vmem>>, vector<1x2x128xf32>
    %68 = vector.shape_cast %67 : vector<1x2x128xf32> to vector<2x128xf32>
    %69 = vector.shape_cast %62 : vector<2x128xf32> to vector<1x2x128xf32>
    tpu.vector_store %arg3[%c0_11, %c0_12, %c0_13], %69 {strides = array<i32>} : memref<2x2x128xf32, #tpu.memory_space<vmem>>, vector<1x2x128xf32>,
    %c1_14 = arith.constant 1 : index
    %c0_15 = arith.constant 0 : index
    %c0_16 = arith.constant 0 : index
    %70 = vector.load %arg3[%c1_14, %c0_15, %c0_16] : memref<2x2x128xf32, #tpu.memory_space<vmem>>, vector<1x2x128xf32>
    %71 = vector.shape_cast %70 : vector<1x2x128xf32> to vector<2x128xf32>
    %72 = vector.shape_cast %66 : vector<2x128xf32> to vector<1x2x128xf32>
    tpu.vector_store %arg3[%c1_14, %c0_15, %c0_16], %72 {strides = array<i32>} : memref<2x2x128xf32, #tpu.memory_space<vmem>>, vector<1x2x128xf32>,
    return
  }
  func.func @transform_0(%arg0: i32) -> i32 {
    %c0_i32 = arith.constant 0 : i32
    %c0_i32_0 = arith.constant 0 : i32
    return %c0_i32 : i32
  }
  func.func @transform_1(%arg0: i32) -> (i32, i32, i32) {
    %c0_i32 = arith.constant 0 : i32
    %c0_i32_0 = arith.constant 0 : i32
    %c0_i32_1 = arith.constant 0 : i32
    return %c0_i32, %arg0, %c0_i32_0 : i32, i32, i32
  }
  func.func @transform_2(%arg0: i32) -> (i32, i32, i32) {
    %c0_i32 = arith.constant 0 : i32
    %c0_i32_0 = arith.constant 0 : i32
    %c0_i32_1 = arith.constant 0 : i32
    return %c0_i32, %arg0, %c0_i32_0 : i32, i32, i32
  }
}

</mosaic_0001>

<bundles_post_ra>
// kernel: tpu_custom_call.1
= control target key start
LH: loop header
LB: loop body
LE: loop exit
PB: predicated region body
PF: predicated region fallthrough
CT: control target
= control target key end

     0   :  { %7 = vsyncpa [#allocation5], 0  ;;  %s231_s0 = inlined_call_operand.hbm [shape: f32[13], index: 0, kind: input, shape index: {}]   ;;  %s232_s1 = inlined_call_operand.hbm [shape: f32[2,2,128], index: 1, kind: input, shape index: {}]   ;;  %s233_s2 = inlined_call_operand.hbm [shape: f32[2,2,128], index: 2, kind: output, shape index: {}]  }
   0x1   :  { %8 = vsyncpa [#allocation3], 0 }
   0x2   :  { %9 = vsyncpa [#allocation4], 0  ;;  %s196_s9 = smov [#allocation2]   ;;  %s197_s12 = smov [#allocation6]  }
   0x3   :  { %17 = dma.hbm_to_smem %s231_s0, 16, %s196_s9, [#allocation5]  }
   0x4   :  { %s23_s13 = sshll.u32 %s197_s12, 4  ;;  %s24_s13 = int_to_ptr.vmem [resolvable:$true] %s23_s13 }
   0x5   :  { %s158_s14 = scalar_lea.vmem %s24_s13, 64  ;;  %p163_p1 = scmp.lt.s32.totalorder %s24_s13, %s24_s13 }
   0x6   :  { %p159_p0 = scmp.ne.s32.totalorder %s24_s13, %s158_s14  ;;  %p164_p2 = scmp.lt.s32.totalorder %s158_s14, %s158_s14 }
   0x8   :  { %p165_p3 = por %p164_p2, %p163_p1 }
   0xa   :  { %p166_p4 = pnand %p165_p3, %p159_p0 }
   0xc   :  { %169 = shalt.err (!%p166_p4)
}
   0xd   :  { %s198_s15 = smov 32   ;;  %s199_s16 = smov 2  }
   0xe   :  { %29 = dma.hbm_to_vmem [thread:$0]  %s232_s1, 64, %s24_s13, [#allocation3], %s198_s15, %s198_s15, %s199_s16  }
   0xf   :  { %190 = dma.done.wait [#allocation5], 16  }
  0x10   :  { %191 = vsyncadd [#allocation5], 4294967280 }
  0x11   :  { %192 = dma.done.wait [#allocation3], 64  }
  0x12   :  { %193 = vsyncadd [#allocation3], 4294967232 }
  0x13   :  { %36 = sfence }
  0x14   :  { %s120_s0 = sld [smem:[#allocation2 + $0x4]]  ;;  %v50_v0 = vld [vmem:[#allocation6] sm:$0x3]  ;;  %v52_v11 = vld [vmem:[#allocation6 + $0x2] sm:$0x3]  ;;  %s200_s3 = smov [#allocation7]  }
  0x15   :  { %s122_s19 = sld [smem:[#allocation2 + $0x6]]  ;;  %s104_s4 = sshll.u32 %s200_s3, 4  ;;  %s105_s4 = int_to_ptr.vmem [resolvable:$true] %s104_s4 }
  0x16   :  { %s121_s20 = sld [smem:[#allocation2 + $0x5]]  ;;  %s170_s5 = scalar_lea.vmem %s105_s4, 64 }
  0x17   :  { %s123_s21 = sld [smem:[#allocation2 + $0x7]]  ;;  %p171_p5 = scmp.ne.s32.totalorder %s105_s4, %s170_s5 }
  0x18   :  { %s124_s22 = sld [smem:[#allocation2 + $0x8]]  ;;  %p175_p6 = scmp.lt.s32.totalorder %s105_s4, %s105_s4 }
  0x19   :  { %s37_s23 = sld [smem:[#allocation2]]  ;;  %p176_p7 = scmp.lt.s32.totalorder %s170_s5, %s170_s5 }
  0x1a   :  { %v53_v1 = vstv %s120_s0  ;;  %s117_s24 = sld [smem:[#allocation2 + $0x1]] }
  0x1b   :  { %v54_v2 = vsub.f32 %v50_v0, %v53_v1  ;;  %v55_v3 = vstv %s122_s19  ;;  %s126_s25 = sld [smem:[#allocation2 + $0xa]]  ;;  %p177_p8 = por %p176_p7, %p175_p6 }
  0x1c   :  { %v60_v5 = vstv %s121_s20  ;;  %s125_s1 = sld [smem:[#allocation2 + $0x9]] }
  0x1d   :  { %v56_v4 = vmul.f32 %v55_v3, %v54_v2  ;;  %v61_v6 = vsub.f32 %v50_v0, %v60_v5  ;;  %s127_s26 = sld [smem:[#allocation2 + $0xb]]  ;;  %v62_v8 = vstv %s123_s21  ;;  %p178_p9 = pnand %p177_p8, %p171_p5 }
  0x1e   :  { %v67_v7 = vstv %s124_s22  ;;  %s118_s27 = sld [smem:[#allocation2 + $0x2]] }
  0x1f   :  { %134 = vtanh.f32 %v56_v4  ;;  %v68_v9 = vmul.f32 %v67_v7, %v61_v6  ;;  %v63_v10 = vmul.f32 %v62_v8, %v61_v6  ;;  %s73_s28 = ssub.f32 0.0, %s37_s23 }
  0x20   :  { %v79_v12 = vstv %s117_s24  ;;  %s128_s29 = sld [smem:[#allocation2 + $0xc]] }
  0x21   :  { %136 = vtanh.f32 %v68_v9  ;;  %v81_v13 = vstv %s126_s25  ;;  %v80_v18 = vmul.f32 %v79_v12, %v52_v11  ;;  %v74_v20 = vstv %s73_s28  ;;  %s119_s30 = sld [smem:[#allocation2 + $0x3]] }
  0x22   :  { %v76_v15 = vstv %s125_s1  ;;  %138 = vtanh.f32 %v63_v10  ;;  %v82_v19 = vsub.f32 %v50_v0, %v81_v13 }
  0x23   :  { %v85_v16 = vstv %s127_s26  ;;  %v77_v22 = vsub.f32 %v50_v0, %v76_v15 }
  0x24   :  { %v86_v23 = vsub.f32 %v50_v0, %v85_v16  ;;  %v87_v24 = vstv %s118_s27  ;;  %v83_v26 = vmul.f32 %v82_v19, %v80_v18 }
  0x26   :  { %v88_v28 = vmul.f32 %v87_v24, %v86_v23  ;;  %v90_v31 = vstv %s128_s29 }
  0x27   :  { %v94_v41 = vstv %s119_s30 }
  0x2c   :  { %v135_v14 = vpop.eup %134 }
  0x2d   :  { %v58_v17 = vmul.f32 0.5, %v135_v14 }
  0x2e   :  { %v137_v29 = vpop.eup %136 }
  0x2f   :  { %v59_v21 = vadd.f32 0.5, %v58_v17  ;;  %v70_v32 = vmul.f32 %v137_v29, %v137_v29  ;;  %v139_v35 = vpop.eup %138 }
  0x30   :  { %v65_v37 = vmul.f32 0.5, %v139_v35 }
  0x31   :  { %v75_v25 = vmul.f32 %v74_v20, %v59_v21  ;;  %v71_v34 = vsub.f32 1.0, %v70_v32 }
  0x32   :  { %v66_v38 = vadd.f32 0.5, %v65_v37 }
  0x33   :  { %v78_v27 = vmul.f32 %v77_v22, %v75_v25  ;;  %140 = vrsqrt.f32 %v71_v34 }
  0x34   :  { %v92_v39 = vsub.f32 %v66_v38, %v52_v11 }
  0x35   :  { %v84_v30 = vsub.f32 %v78_v27, %v83_v26 }
  0x37   :  { %v89_v33 = vsub.f32 %v84_v30, %v88_v28 }
  0x39   :  { %v91_v36 = vadd.f32 %v90_v31, %v89_v33 }
  0x3b   :  { %96 = vst [vmem:[#allocation7] sm:$0x3] %v91_v36 }
  0x40   :  { %v141_v40 = vpop.eup %140 }
  0x41   :  { %v93_v42 = vmul.f32 %v141_v40, %v92_v39 }
  0x43   :  { %v95_v43 = vmul.f32 %v94_v41, %v93_v42 }
  0x45   :  { %98 = vst [vmem:[#allocation7 + $0x2] sm:$0x3] %v95_v43 }
  0x46   :  { %181 = shalt.err (!%p178_p9)
}
  0x47   :  { %110 = dma.vmem_to_hbm [thread:$0]  %s105_s4, 64, %s233_s2, [#allocation4], %s198_s15, %s198_s15, %s199_s16  }
  0x48   :  { %194 = dma.done.wait [#allocation4], 64  }
  0x49   :  { %195 = vsyncadd [#allocation4], 4294967232 }
  0x4a   :  { %114 = vsyncpa [#allocation3], 1 }
  0x4b   :  { %115 = vsyncpa [#allocation4], 1 }
  0x4c   :  { %116 = vsyncpa [#allocation5], 1 }

</bundles_post_ra>
